<compile_context>
chip_gen: v6e
topology: v6e:2x2x1
jax: 0.10.0
libtpu: 0.0.40
codegen_flags: <defaults>
</compile_context>

<pallas_src>
from functools import partial

import jax
import jax.numpy as jnp
from jax import lax
from jax.experimental import pallas as pl
from jax.experimental.pallas import tpu as pltpu


# Exact by default so the strict f32 reference tolerance (1e-4) holds; flip
# to True to route the (N, 1) softmax-denominator reciprocal to the
# otherwise-idle EUP slot when running with looser tolerance / bf16.
APPROX_SOFTMAX_RECIP = False


# --------------------- per-generation tiling budget -------------------------

def _tpu_budget():
    """(row_tile_cap, vmem_limit_bytes), sized per TPU generation.

    v5e / v6e have 128 MiB VMEM -> 1024-row tiles, ~96 MiB request (the
    explicit limit is load-bearing on v5e, whose scoped default is 16 MiB).
    v7x has 64 MiB per TensorCore -> 512-row tiles and a <64 MiB request so
    the compiler keeps headroom for internal scratch / semaphores.
    Falls back to the conservative (v7x-safe) numbers if the query fails.
    """
    vmem = 64 * 1024 * 1024
    try:
        info = pltpu.get_tpu_info()
        vmem = int(getattr(info, "vmem_capacity_bytes", vmem))
    except Exception:
        pass
    if vmem > 64 * 1024 * 1024:            # v5e / v6e class (128 MiB)
        return 1024, 96 * 1024 * 1024
    return 512, 56 * 1024 * 1024           # v7x class (64 MiB / TC)


ROW_TILE_CAP, VMEM_LIMIT = _tpu_budget()


def _row_tile(m, k, o):
    """Largest row tile (multiple of 8, <= per-gen cap) whose double-buffered
    x/out f32 tiles plus single-buffered weights fit in ~3/4 of the VMEM
    request (the review's 'compute the actual footprint' rule)."""
    cap = ROW_TILE_CAP
    while cap > 64:
        tiles = 2 * 4 * cap * (k + o)          # double-buffered x + out tiles
        weights = 4 * (k * o + o)              # single-buffered Wt + bias
        if tiles + weights <= (VMEM_LIMIT * 3) // 4:
            break
        cap //= 2
    return m if m <= cap else cap


def _resident_spec(block_shape, index_map):
    """BlockSpec for an operand whose block never changes across the grid
    (weights / bias): request single-buffering so it is not double-buffered
    in VMEM.  Falls back cleanly on JAX versions without pipeline_mode."""
    if hasattr(pl, "Buffered"):
        try:
            return pl.BlockSpec(block_shape, index_map,
                                pipeline_mode=pl.Buffered(1))
        except TypeError:
            pass
    return pl.BlockSpec(block_shape, index_map)


# ----------------------------- Pallas kernels ------------------------------

def _matmul_bias_kernel(x_ref, wt_ref, b_ref, o_ref):
    """o = x @ Wt + b.   x: (TM, K); Wt: (K, O); b: (1, O); o: (TM, O).

    Used both for the fused QKV projection (Wt is the column-stacked
    [Wq^T*scale | Wk^T | Wv^T], O = 3C) and for the output projection.
    One MXU pass, f32 accumulation, lane-dense output slab."""
    y = jnp.dot(x_ref[...], wt_ref[...], preferred_element_type=jnp.float32)
    o_ref[...] = (y + b_ref[...]).astype(o_ref.dtype)


def _attn_kernel(q_ref, k_ref, v_ref, o_ref):
    """One (batch, head) per grid step.  Blocks are (1, 1, N, D) with D the
    full head_dim, so there are no mid-vreg lane slices, no per-head concat,
    and the store is one full-block slab.

    The attention scale is already folded into the q-projection weights.
    Softmax normalization is deferred to the (N, D) output."""
    q = q_ref[0, 0]                        # (N, D)
    k = k_ref[0, 0]                        # (N, D)
    v = v_ref[0, 0]                        # (N, D)
    # scores = q @ k^T (contract head_dim); f32 accumulation on the MXU.
    s = lax.dot_general(q, k, (((1,), (1,)), ((), ())),
                        preferred_element_type=jnp.float32)        # (N, N)
    s = s - jnp.max(s, axis=-1, keepdims=True)
    p = jnp.exp(s)
    denom = jnp.sum(p, axis=-1, keepdims=True)                     # (N, 1)
    acc = jnp.dot(p.astype(v.dtype), v,
                  preferred_element_type=jnp.float32)              # (N, D)
    out = acc * pl.reciprocal(denom, approx=APPROX_SOFTMAX_RECIP)
    o_ref[0, 0] = out.astype(o_ref.dtype)
    # TODO(synk): for N in the thousands convert to a flash-style kernel
    # (KV grid axis + online-softmax scratch) so the N x N scores never
    # materialize; fine at ViT-scale N (hits v7x's 64 MiB VMEM first).


# ------------------------------ wrappers ------------------------------------

def pallas_matmul_bias(x2d, wt, b2):
    """x2d: (M, K); wt: (K, O) pre-transposed; b2: (1, O) -> (M, O)."""
    M, K = x2d.shape
    O = wt.shape[1]
    tm = _row_tile(M, K, O)
    cost = pl.CostEstimate(flops=2 * M * K * O, transcendentals=0,
                           bytes_accessed=4 * (M * K + K * O + M * O))
    return pl.pallas_call(
        _matmul_bias_kernel,
        out_shape=jax.ShapeDtypeStruct((M, O), x2d.dtype),
        grid=(pl.cdiv(M, tm),),
        in_specs=[pl.BlockSpec((tm, K), lambda i: (i, 0)),
                  _resident_spec((K, O), lambda i: (0, 0)),
                  _resident_spec((1, O), lambda i: (0, 0))],
        out_specs=pl.BlockSpec((tm, O), lambda i: (i, 0)),
        compiler_params=pltpu.CompilerParams(
            dimension_semantics=("parallel",),
            vmem_limit_bytes=VMEM_LIMIT),
        cost_estimate=cost,
    )(x2d, wt, b2)


def pallas_attention(q, k, v):
    """q/k/v: (B, H, N, D) -> (B, H, N, D); one (batch, head) per grid step."""
    B, H, N, D = q.shape
    cost = pl.CostEstimate(flops=4 * B * H * N * N * D,
                           transcendentals=B * H * N * N,
                           bytes_accessed=4 * 4 * B * H * N * D)
    spec = pl.BlockSpec((1, 1, N, D), lambda b, h: (b, h, 0, 0))
    return pl.pallas_call(
        _attn_kernel,
        out_shape=jax.ShapeDtypeStruct((B, H, N, D), q.dtype),
        grid=(B, H),
        in_specs=[spec, spec, spec],
        out_specs=spec,
        compiler_params=pltpu.CompilerParams(
            dimension_semantics=("parallel", "parallel"),
            vmem_limit_bytes=VMEM_LIMIT),
        cost_estimate=cost,
    )(q, k, v)


def prepare_params(params, num_heads):
    """One-time parameter preprocessing, hoisted out of the forward pass:
    pre-transpose to (in, out) layout, column-stack Q/K/V weights so the QKV
    projection is a single (C, 3C) matmul, and fold the attention scale into
    the q-projection weights / bias."""
    C = params["wq"].shape[0]
    scale = (C // num_heads) ** -0.5
    wqkv_t = jnp.concatenate(
        [params["wq"].T * scale, params["wk"].T, params["wv"].T], axis=1)   # (C, 3C)
    bqkv = jnp.concatenate(
        [params["bq"] * scale, params["bk"], params["bv"]]).reshape(1, 3 * C)
    return {"wqkv_t": wqkv_t, "bqkv": bqkv,
            "wp_t": params["wp"].T, "bp": params["bp"].reshape(1, C)}


@partial(jax.jit, static_argnums=(2,))
def attention_forward(x, prepped, num_heads):
    """Pallas implementation of Attention.forward.

    attn_drop / proj_drop are identity (p=0.0 defaults / eval mode)."""
    B, N, C = x.shape
    D = C // num_heads

    # Fused Q/K/V: x streamed from HBM once, one (C, 3C) matmul.
    qkv = pallas_matmul_bias(x.reshape(B * N, C),
                             prepped["wqkv_t"], prepped["bqkv"])    # (B*N, 3C)

    # Head split to (3, B, H, N, D): one XLA transpose (same op the PyTorch
    # reference performs) so the attention kernel gets full-head_dim blocks
    # and a (B, H) grid — no mid-vreg lane slices / concat in-kernel.
    qkv = qkv.reshape(B, N, 3, num_heads, D).transpose(2, 0, 3, 1, 4)
    q, k, v = qkv[0], qkv[1], qkv[2]

    o = pallas_attention(q, k, v)                                   # (B, H, N, D)
    o = o.transpose(0, 2, 1, 3).reshape(B * N, C)                   # head merge

    y = pallas_matmul_bias(o, prepped["wp_t"], prepped["bp"])
    return y.reshape(B, N, C)
    # TODO(synk): attn_drop / proj_drop with p > 0 in training mode are not
    # implemented (p=0.0 defaults -> identity).


# ------------------------------ reference -----------------------------------

def attention_reference(x, params, num_heads):
    B, N, C = x.shape
    hd = C // num_heads
    scale = hd ** -0.5
    q = x @ params["wq"].T + params["bq"]
    k = x @ params["wk"].T + params["bk"]
    v = x @ params["wv"].T + params["bv"]

    def sh(t):
        return (t.reshape(B, N, num_heads, hd)
                 .transpose(0, 2, 1, 3)
                 .reshape(B * num_heads, N, hd))

    q, k, v = sh(q), sh(k), sh(v)
    s = jnp.einsum("bnd,bmd->bnm", q, k) * scale
    p = jax.nn.softmax(s, axis=-1)
    o = jnp.einsum("bnm,bmd->bnd", p, v)
    o = (o.reshape(B, num_heads, N, hd).transpose(0, 2, 1, 3).reshape(B, N, C))
    return o @ params["wp"].T + params["bp"]


# -------------------------------- main ---------------------------------------

if __name__ == "__main__":
    B, N, C = 2, 8, 32
    num_heads = 8                     # head_dim = 4

    key = jax.random.PRNGKey(0)
    kx, kq, kk, kv, kp, kb = jax.random.split(key, 6)

    x = jax.random.normal(kx, (B, N, C), dtype=jnp.float32)

    std = 1.0 / (C ** 0.5)
    params = {
        # q_proj / k_proj / v_proj: nn.Linear(dim, dim, bias=False)
        "wq": jax.random.normal(kq, (C, C), dtype=jnp.float32) * std,
        "wk": jax.random.normal(kk, (C, C), dtype=jnp.float32) * std,
        "wv": jax.random.normal(kv, (C, C), dtype=jnp.float32) * std,
        "bq": jnp.zeros((C,), dtype=jnp.float32),
        "bk": jnp.zeros((C,), dtype=jnp.float32),
        "bv": jnp.zeros((C,), dtype=jnp.float32),
        # proj: nn.Linear(dim, dim) with bias
        "wp": jax.random.normal(kp, (C, C), dtype=jnp.float32) * std,
        "bp": jax.random.normal(kb, (C,), dtype=jnp.float32) * std,
    }

    prepped = prepare_params(params, num_heads)       # one-time preprocessing
    out = attention_forward(x, prepped, num_heads)
    out = jax.block_until_ready(out)

    ref = attention_reference(x, params, num_heads)
    assert out.shape == (B, N, C)
    assert jnp.allclose(out, ref, atol=1e-4, rtol=1e-4), "mismatch vs reference"

    print("KERNEL_OK")
</pallas_src>

<mosaic_0001>
module attributes {stable_mosaic.version = 11 : i64} {
  func.func @_matmul_bias_kernel(%arg0: i32, %arg1: memref<16x32xf32, #tpu.memory_space<vmem>>, %arg2: memref<32x96xf32, #tpu.memory_space<vmem>>, %arg3: memref<1x96xf32, #tpu.memory_space<vmem>>, %arg4: memref<16x96xf32, #tpu.memory_space<vmem>>) attributes {dimension_semantics = [#tpu.dimension_semantics<parallel>], iteration_bounds = array<i64: 1>, scalar_prefetch = 0 : i64, scratch_operands = 0 : i64, tpu.core_type = #tpu.core_type<tc>, window_params = [{transform_indices = @transform_0, window_bounds = array<i64: 16, 32>}, {pipeline_mode = #tpu.pipeline_mode<synchronous>, transform_indices = @transform_1, window_bounds = array<i64: 32, 96>}, {pipeline_mode = #tpu.pipeline_mode<synchronous>, transform_indices = @transform_2, window_bounds = array<i64: 1, 96>}, {transform_indices = @transform_3, window_bounds = array<i64: 16, 96>}]} {
    %c0 = arith.constant 0 : index
    %c0_0 = arith.constant 0 : index
    %0 = vector.load %arg1[%c0, %c0_0] : memref<16x32xf32, #tpu.memory_space<vmem>>, vector<16x32xf32>
    %c0_1 = arith.constant 0 : index
    %c0_2 = arith.constant 0 : index
    %1 = vector.load %arg2[%c0_1, %c0_2] : memref<32x96xf32, #tpu.memory_space<vmem>>, vector<32x96xf32>
    %cst = arith.constant dense<0.000000e+00> : vector<16x96xf32>
    %2 = tpu.matmul %0, %1, %cst {dimension_numbers = #tpu.dot_dimension_numbers<[1], [0], [0], [1], [0, 0, 1, 1], [], []>} : vector<16x32xf32>, vector<32x96xf32>, vector<16x96xf32> -> vector<16x96xf32>
    %c0_3 = arith.constant 0 : index
    %c0_4 = arith.constant 0 : index
    %3 = vector.load %arg3[%c0_3, %c0_4] : memref<1x96xf32, #tpu.memory_space<vmem>>, vector<1x96xf32>
    %4 = vector.broadcast %3 : vector<1x96xf32> to vector<16x96xf32>
    %5 = arith.addf %2, %4 : vector<16x96xf32>
    %c0_5 = arith.constant 0 : index
    %c0_6 = arith.constant 0 : index
    %6 = vector.load %arg4[%c0_5, %c0_6] : memref<16x96xf32, #tpu.memory_space<vmem>>, vector<16x96xf32>
    tpu.vector_store %arg4[%c0_5, %c0_6], %5 {strides = array<i32>} : memref<16x96xf32, #tpu.memory_space<vmem>>, vector<16x96xf32>,
    return
  }
  func.func @transform_0(%arg0: i32) -> (i32, i32) {
    %c0_i32 = arith.constant 0 : i32
    %c0_i32_0 = arith.constant 0 : i32
    return %arg0, %c0_i32 : i32, i32
  }
  func.func @transform_1(%arg0: i32) -> (i32, i32) {
    %c0_i32 = arith.constant 0 : i32
    %c0_i32_0 = arith.constant 0 : i32
    %c0_i32_1 = arith.constant 0 : i32
    return %c0_i32, %c0_i32_0 : i32, i32
  }
  func.func @transform_2(%arg0: i32) -> (i32, i32) {
    %c0_i32 = arith.constant 0 : i32
    %c0_i32_0 = arith.constant 0 : i32
    %c0_i32_1 = arith.constant 0 : i32
    return %c0_i32, %c0_i32_0 : i32, i32
  }
  func.func @transform_3(%arg0: i32) -> (i32, i32) {
    %c0_i32 = arith.constant 0 : i32
    %c0_i32_0 = arith.constant 0 : i32
    return %arg0, %c0_i32 : i32, i32
  }
}

module attributes {stable_mosaic.version = 11 : i64} {
  func.func @_attn_kernel(%arg0: i32, %arg1: i32, %arg2: memref<1x1x8x4xf32, #tpu.memory_space<vmem>>, %arg3: memref<1x1x8x4xf32, #tpu.memory_space<vmem>>, %arg4: memref<1x1x8x4xf32, #tpu.memory_space<vmem>>, %arg5: memref<1x1x8x4xf32, #tpu.memory_space<vmem>>) attributes {dimension_semantics = [#tpu.dimension_semantics<parallel>, #tpu.dimension_semantics<parallel>], iteration_bounds = array<i64: 2, 8>, scalar_prefetch = 0 : i64, scratch_operands = 0 : i64, tpu.core_type = #tpu.core_type<tc>, window_params = [{transform_indices = @transform_0, window_bounds = array<i64: 1, 1, 8, 4>}, {transform_indices = @transform_1, window_bounds = array<i64: 1, 1, 8, 4>}, {transform_indices = @transform_2, window_bounds = array<i64: 1, 1, 8, 4>}, {transform_indices = @transform_3, window_bounds = array<i64: 1, 1, 8, 4>}]} {
    %c0 = arith.constant 0 : index
    %c0_0 = arith.constant 0 : index
    %c0_1 = arith.constant 0 : index
    %c0_2 = arith.constant 0 : index
    %0 = vector.load %arg2[%c0, %c0_0, %c0_1, %c0_2] : memref<1x1x8x4xf32, #tpu.memory_space<vmem>>, vector<1x1x8x4xf32>
    %1 = vector.shape_cast %0 : vector<1x1x8x4xf32> to vector<8x4xf32>
    %c0_3 = arith.constant 0 : index
    %c0_4 = arith.constant 0 : index
    %c0_5 = arith.constant 0 : index
    %c0_6 = arith.constant 0 : index
    %2 = vector.load %arg3[%c0_3, %c0_4, %c0_5, %c0_6] : memref<1x1x8x4xf32, #tpu.memory_space<vmem>>, vector<1x1x8x4xf32>
    %3 = vector.shape_cast %2 : vector<1x1x8x4xf32> to vector<8x4xf32>
    %c0_7 = arith.constant 0 : index
    %c0_8 = arith.constant 0 : index
    %c0_9 = arith.constant 0 : index
    %c0_10 = arith.constant 0 : index
    %4 = vector.load %arg4[%c0_7, %c0_8, %c0_9, %c0_10] : memref<1x1x8x4xf32, #tpu.memory_space<vmem>>, vector<1x1x8x4xf32>
    %5 = vector.shape_cast %4 : vector<1x1x8x4xf32> to vector<8x4xf32>
    %cst = arith.constant dense<0.000000e+00> : vector<8x8xf32>
    %6 = tpu.matmul %1, %3, %cst {dimension_numbers = #tpu.dot_dimension_numbers<[1], [1], [0], [0], [0, 0, 1, 0], [], []>} : vector<8x4xf32>, vector<8x4xf32>, vector<8x8xf32> -> vector<8x8xf32>
    %cst_11 = arith.constant dense<0xFF800000> : vector<8xf32>
    %7 = vector.multi_reduction <maximumf>, %6, %cst_11 [1] : vector<8x8xf32> to vector<8xf32>
    %8 = vector.shape_cast %7 : vector<8xf32> to vector<8x1xf32>
    %9 = vector.broadcast %8 : vector<8x1xf32> to vector<8x8xf32>
    %10 = arith.subf %6, %9 : vector<8x8xf32>
    %11 = math.exp %10 : vector<8x8xf32>
    %cst_12 = arith.constant dense<0.000000e+00> : vector<8xf32>
    %12 = vector.multi_reduction <add>, %11, %cst_12 [1] : vector<8x8xf32> to vector<8xf32>
    %13 = vector.shape_cast %12 : vector<8xf32> to vector<8x1xf32>
    %cst_13 = arith.constant dense<0.000000e+00> : vector<8x4xf32>
    %14 = tpu.matmul %11, %5, %cst_13 {dimension_numbers = #tpu.dot_dimension_numbers<[1], [0], [0], [1], [0, 0, 1, 1], [], []>} : vector<8x8xf32>, vector<8x4xf32>, vector<8x4xf32> -> vector<8x4xf32>
    %15 = tpu.reciprocal %13 : vector<8x1xf32> -> vector<8x1xf32>
    %16 = vector.broadcast %15 : vector<8x1xf32> to vector<8x4xf32>
    %17 = arith.mulf %14, %16 : vector<8x4xf32>
    %c0_14 = arith.constant 0 : index
    %c0_15 = arith.constant 0 : index
    %c0_16 = arith.constant 0 : index
    %c0_17 = arith.constant 0 : index
    %18 = vector.load %arg5[%c0_14, %c0_15, %c0_16, %c0_17] : memref<1x1x8x4xf32, #tpu.memory_space<vmem>>, vector<1x1x8x4xf32>
    %19 = vector.shape_cast %18 : vector<1x1x8x4xf32> to vector<8x4xf32>
    %20 = vector.shape_cast %17 : vector<8x4xf32> to vector<1x1x8x4xf32>
    tpu.vector_store %arg5[%c0_14, %c0_15, %c0_16, %c0_17], %20 {strides = array<i32>} : memref<1x1x8x4xf32, #tpu.memory_space<vmem>>, vector<1x1x8x4xf32>,
    return
  }
  func.func @transform_0(%arg0: i32, %arg1: i32) -> (i32, i32, i32, i32) {
    %c0_i32 = arith.constant 0 : i32
    %c0_i32_0 = arith.constant 0 : i32
    %c0_i32_1 = arith.constant 0 : i32
    return %arg0, %arg1, %c0_i32, %c0_i32_0 : i32, i32, i32, i32
  }
  func.func @transform_1(%arg0: i32, %arg1: i32) -> (i32, i32, i32, i32) {
    %c0_i32 = arith.constant 0 : i32
    %c0_i32_0 = arith.constant 0 : i32
    %c0_i32_1 = arith.constant 0 : i32
    return %arg0, %arg1, %c0_i32, %c0_i32_0 : i32, i32, i32, i32
  }
  func.func @transform_2(%arg0: i32, %arg1: i32) -> (i32, i32, i32, i32) {
    %c0_i32 = arith.constant 0 : i32
    %c0_i32_0 = arith.constant 0 : i32
    %c0_i32_1 = arith.constant 0 : i32
    return %arg0, %arg1, %c0_i32, %c0_i32_0 : i32, i32, i32, i32
  }
  func.func @transform_3(%arg0: i32, %arg1: i32) -> (i32, i32, i32, i32) {
    %c0_i32 = arith.constant 0 : i32
    %c0_i32_0 = arith.constant 0 : i32
    %c0_i32_1 = arith.constant 0 : i32
    return %arg0, %arg1, %c0_i32, %c0_i32_0 : i32, i32, i32, i32
  }
}

module attributes {stable_mosaic.version = 11 : i64} {
  func.func @_matmul_bias_kernel(%arg0: i32, %arg1: memref<16x32xf32, #tpu.memory_space<vmem>>, %arg2: memref<32x32xf32, #tpu.memory_space<vmem>>, %arg3: memref<1x32xf32, #tpu.memory_space<vmem>>, %arg4: memref<16x32xf32, #tpu.memory_space<vmem>>) attributes {dimension_semantics = [#tpu.dimension_semantics<parallel>], iteration_bounds = array<i64: 1>, scalar_prefetch = 0 : i64, scratch_operands = 0 : i64, tpu.core_type = #tpu.core_type<tc>, window_params = [{transform_indices = @transform_0, window_bounds = array<i64: 16, 32>}, {pipeline_mode = #tpu.pipeline_mode<synchronous>, transform_indices = @transform_1, window_bounds = array<i64: 32, 32>}, {pipeline_mode = #tpu.pipeline_mode<synchronous>, transform_indices = @transform_2, window_bounds = array<i64: 1, 32>}, {transform_indices = @transform_3, window_bounds = array<i64: 16, 32>}]} {
    %c0 = arith.constant 0 : index
    %c0_0 = arith.constant 0 : index
    %0 = vector.load %arg1[%c0, %c0_0] : memref<16x32xf32, #tpu.memory_space<vmem>>, vector<16x32xf32>
    %c0_1 = arith.constant 0 : index
    %c0_2 = arith.constant 0 : index
    %1 = vector.load %arg2[%c0_1, %c0_2] : memref<32x32xf32, #tpu.memory_space<vmem>>, vector<32x32xf32>
    %cst = arith.constant dense<0.000000e+00> : vector<16x32xf32>
    %2 = tpu.matmul %0, %1, %cst {dimension_numbers = #tpu.dot_dimension_numbers<[1], [0], [0], [1], [0, 0, 1, 1], [], []>} : vector<16x32xf32>, vector<32x32xf32>, vector<16x32xf32> -> vector<16x32xf32>
    %c0_3 = arith.constant 0 : index
    %c0_4 = arith.constant 0 : index
    %3 = vector.load %arg3[%c0_3, %c0_4] : memref<1x32xf32, #tpu.memory_space<vmem>>, vector<1x32xf32>
    %4 = vector.broadcast %3 : vector<1x32xf32> to vector<16x32xf32>
    %5 = arith.addf %2, %4 : vector<16x32xf32>
    %c0_5 = arith.constant 0 : index
    %c0_6 = arith.constant 0 : index
    %6 = vector.load %arg4[%c0_5, %c0_6] : memref<16x32xf32, #tpu.memory_space<vmem>>, vector<16x32xf32>
    tpu.vector_store %arg4[%c0_5, %c0_6], %5 {strides = array<i32>} : memref<16x32xf32, #tpu.memory_space<vmem>>, vector<16x32xf32>,
    return
  }
  func.func @transform_0(%arg0: i32) -> (i32, i32) {
    %c0_i32 = arith.constant 0 : i32
    %c0_i32_0 = arith.constant 0 : i32
    return %arg0, %c0_i32 : i32, i32
  }
  func.func @transform_1(%arg0: i32) -> (i32, i32) {
    %c0_i32 = arith.constant 0 : i32
    %c0_i32_0 = arith.constant 0 : i32
    %c0_i32_1 = arith.constant 0 : i32
    return %c0_i32, %c0_i32_0 : i32, i32
  }
  func.func @transform_2(%arg0: i32) -> (i32, i32) {
    %c0_i32 = arith.constant 0 : i32
    %c0_i32_0 = arith.constant 0 : i32
    %c0_i32_1 = arith.constant 0 : i32
    return %c0_i32, %c0_i32_0 : i32, i32
  }
  func.func @transform_3(%arg0: i32) -> (i32, i32) {
    %c0_i32 = arith.constant 0 : i32
    %c0_i32_0 = arith.constant 0 : i32
    return %arg0, %c0_i32 : i32, i32
  }
}

</mosaic_0001>

<bundles_post_ra>
// kernel: attention_forward.3
= control target key start
LH: loop header
LB: loop body
LE: loop exit
PB: predicated region body
PF: predicated region fallthrough
CT: control target
= control target key end

     0   :  { %8 = vsyncpa [#allocation3], 0  ;;  %s255_s0 = inlined_call_operand.hbm [shape: f32[16,32], index: 0, kind: input, shape index: {}]   ;;  %s256_s1 = inlined_call_operand.hbm [shape: f32[32,96], index: 1, kind: input, shape index: {}]   ;;  %s257_s2 = inlined_call_operand.vmem [shape: f32[1,96], index: 2, kind: input, shape index: {}]   ;;  %s258_s3 = inlined_call_operand.vmem [shape: f32[16,96], index: 3, kind: output, shape index: {}]  }
   0x1   :  { %9 = vsyncpa [#allocation5], 0  ;;  %s214_s12 = smov [#allocation2]  }
   0x2   :  { %s15_s13 = sshll.u32 %s214_s12, 4  ;;  %s16_s13 = int_to_ptr.vmem [resolvable:$true] %s15_s13 }
   0x3   :  { %s178_s14 = scalar_lea.vmem %s16_s13, 256  ;;  %p183_p1 = scmp.lt.s32.totalorder %s16_s13, %s16_s13 }
   0x4   :  { %p179_p0 = scmp.ne.s32.totalorder %s16_s13, %s178_s14  ;;  %p184_p2 = scmp.lt.s32.totalorder %s178_s14, %s178_s14 }
   0x6   :  { %p185_p3 = por %p184_p2, %p183_p1 }
   0x8   :  { %p186_p4 = pnand %p185_p3, %p179_p0 }
   0xa   :  { %189 = shalt.err (!%p186_p4)
}
   0xb   :  { %s215_s15 = smov 128   ;;  %s216_s16 = smov 8  }
   0xc   :  { %21 = dma.hbm_to_vmem [thread:$0]  %s255_s0, 256, %s16_s13, [#allocation3], %s215_s15, %s215_s15, %s216_s16  }
   0xd   :  { %s217_s19 = smov [#allocation4]  }
   0xe   :  { %s27_s20 = sshll.u32 %s217_s19, 4  ;;  %s28_s20 = int_to_ptr.vmem [resolvable:$true] %s27_s20 }
   0xf   :  { %s198_s21 = scalar_lea.vmem %s28_s20, 512  ;;  %p203_p6 = scmp.lt.s32.totalorder %s28_s20, %s28_s20 }
  0x10   :  { %p199_p5 = scmp.ne.s32.totalorder %s28_s20, %s198_s21  ;;  %p204_p7 = scmp.lt.s32.totalorder %s198_s21, %s198_s21 }
  0x12   :  { %p205_p8 = por %p204_p7, %p203_p6 }
  0x14   :  { %p206_p9 = pnand %p205_p8, %p199_p5 }
  0x16   :  { %209 = shalt.err (!%p206_p9)
}
  0x17   :  { %33 = dma.hbm_to_vmem [thread:$0]  %s256_s1, 512, %s28_s20, [#allocation5], %s215_s15, %s215_s15, %s216_s16  }
  0x18   :  { %210 = dma.done.wait [#allocation3], 256  }
  0x19   :  { %211 = vsyncadd [#allocation3], 4294967040 }
  0x1a   :  { %212 = dma.done.wait [#allocation5], 512  }
  0x1b   :  { %213 = vsyncadd [#allocation5], 4294966784  ;;  %vm55_vm0 = vcmask 261120   ;;  %v47_v0 = vld [vmem:[#allocation4 + $0x18] sm:$0xff]  ;;  %v46_v1 = vld [vmem:[#allocation4 + $0x10] sm:$0xff]  ;;  %vm137_vm1 = vcmask 785408  }
  0x1c   :  { %155 = vmatprep.subr.mxu0 %v47_v0  ;;  %v42_v2 = vld [vmem:[#allocation2] sm:$0xff]  ;;  %v45_v3 = vld [vmem:[#allocation4 + $0x8] sm:$0xff]  ;;  %v44_v4 = vld [vmem:[#allocation4] sm:$0xff] }
  0x1d   :  { %156 = vmatpush3.msra.mxu0 %v47_v0  ;;  %163 = vmatprep.mubr.msk.f32.mxu0 %vm55_vm0, %v42_v2  ;;  %v43_v5 = vld [vmem:[#allocation2 + $0x8] sm:$0xff]  ;;  %v146_v6 = vld [vmem:[%s257_s2] ss:$0 sm:$0xff] }
  0x1e   :  { %157 = vmatprep.subr.mxu0 %v46_v1 }
  0x1f   :  { %158 = vmatpush3.msra.mxu0 %v46_v1 }
  0x20   :  { %159 = vmatprep.subr.mxu0 %v45_v3 }
  0x21   :  { %160 = vmatpush3.msra.mxu0 %v45_v3 }
  0x22   :  { %161 = vmatprep.subr.mxu0 %v44_v4 }
  0x23   :  { %162 = vmatpush3.msra.mxu0 %v44_v4 }
  0x24   :  { %164 = vmatmul.mubr.msk.f32.vlgmr.msra.gmra.mxu0 %vm55_vm0, %v43_v5 }
  0xe4   :  { %v165_v7 = vpop.f32.mrf.mxu0 }
  0xe5   :  { %v134_v8 = vadd.f32 %v165_v7, %v146_v6 }
  0xe6   :  { %v128_v9 = vpop.f32.mrf.mxu0 }
  0xe7   :  { %139 = vst.msk [vmem:[%s258_s3 + $0x8] sm:$0xff] %vm137_vm1, %v134_v8  ;;  %v129_v10 = vadd.f32 %v146_v6, %v128_v9 }
  0xe9   :  { %138 = vst.msk [vmem:[%s258_s3] sm:$0xff] %vm137_vm1, %v129_v10 }
  0xea   :  { %144 = vsyncpa [#allocation3], 1 }
  0xeb   :  { %145 = vsyncpa [#allocation5], 1 }

// kernel: attention_forward.4
= control target key start
LH: loop header
LB: loop body
LE: loop exit
PB: predicated region body
PF: predicated region fallthrough
CT: control target
= control target key end

     0   :  { %s692_s12 = smov 0   ;;  %s694_s13 = smov 0   ;;  %s758_s0 = inlined_call_operand.vmem [shape: f32[2,8,8,4], index: 0, kind: input, shape index: {}]   ;;  %s759_s1 = inlined_call_operand.vmem [shape: f32[2,8,8,4], index: 1, kind: input, shape index: {}]   ;;  %s760_s2 = inlined_call_operand.vmem [shape: f32[2,8,8,4], index: 2, kind: input, shape index: {}]   ;;  %s761_s3 = inlined_call_operand.vmem [shape: f32[2,8,8,4], index: 3, kind: output, shape index: {}]  }
   0x1   :  { %s696_s14 = smov 0   ;;  %s698_s15 = smov 0  }
   0x2   :  { %s700_s16 = smov 0  }
   0x3 LB: > { %s22_s17 = sadd.s32 1, %s660_s14  ;;  %s25_s18 = sadd.s32 1, %s664_s15  ;;  %s668_s16 = sphi %s700_s16, %s13_s16   ;;  %s664_s15 = sphi %s698_s15, %s765_s15   ;;  %s660_s14 = sphi %s696_s14, %s764_s14   ;;  %s656_s13 = sphi %s694_s13, %s763_s13   ;;  %s652_s12 = sphi %s692_s12, %s762_s12  }
   0x4   : > { %p23_p0 = scmp.ge.s32.totalorder %s22_s17, 8  ;;  %p556_p1 = scmp.ge.s32.totalorder %s668_s16, 1 }
   0x5   : > { %p186_p2 = scmp.lt.s32.totalorder %s668_s16, 17 }
   0x6   : > { %s767_s17 = smov (%p23_p0, %s22_s17), 0  ;;  %s769_s18 = smov (!%p23_p0, %s25_s18), %s664_s15 }
   0x7   : > { %p187_p3 = pnand %p556_p1, %p186_p2  ;;  %p27_p4 = scmp.ge.s32.totalorder %s769_s18, 2 }
   0x8   : > { %p232_p5 = scmp.lt.s32.totalorder (!%p187_p3), %s656_s13, 1  ;;  %p234_p6 = scmp.lt.s32.totalorder (!%p187_p3), %s652_s12, 7 }
   0x9   : > { %s771_s18 = smov (%p27_p4, %s769_s18), 0  ;;  %190 = sbr.rel (%p187_p3) target bundleno = 569 (0x239), region = 32 }
   0xe   : > { %v670_v0 = vmov 0.0   ;;  %vm671_vm0 = vmmov 0   ;;  %s773_s13 = smov (!%p232_p5, %s656_s13), 1  ;;  %s775_s12 = smov (!%p234_p6, %s652_s12), 7  ;;  %vm267_vm1 = vcmask 31744   ;;  %vm344_vm2 = vcmask 64512  }
   0xf   : > { %574 = vmatprep.subr.mxu0 %v670_v0  ;;  %576 = vmatprep.mubr.msk.f32.mxu0 %vm671_vm0, %v670_v0  ;;  %s557_s19 = sshll.u32 %s773_s13, 3 }
  0x10   : > { %579 = vmatprep.subr.mxu1 %v670_v0  ;;  %581 = vmatprep.mubr.msk.f32.mxu1 %vm671_vm0, %v670_v0  ;;  %s237_s20 = sadd.s32 %s557_s19, %s775_s12 }
  0x11   : > { %s722_s21 = sshll.u32 %s237_s20, 3 }
  0x12   : > { %s247_s24 = scalar_lea.vmem %s759_s1, %s722_s21  ;;  %s239_s27 = scalar_lea.vmem %s758_s0, %s722_s21 }
  0x13   : > { %v265_v1 = vld [vmem:[%s247_s24] sm:$0xff]  ;;  %s255_s30 = scalar_lea.vmem %s760_s2, %s722_s21  ;;  %s263_s6 = scalar_lea.vmem %s761_s3, %s722_s21 }
  0x14   : > { %575 = vmatpush3.xpose.msk.msra.mxu0 %vm267_vm1, %v265_v1  ;;  %v264_v2 = vld [vmem:[%s239_s27] sm:$0xff] }
  0x15   : > { %v266_v6 = vld [vmem:[%s255_s30] sm:$0xff] }
  0x16   : > { %580 = vmatpush3.msra.mxu1 %v266_v6 }
  0x17   : > { %577 = vmatmul.mubr.msk.f32.vlgmr.msra.gmra.mxu0 %vm267_vm1, %v264_v2 }
  0xd7   : > { %v340_v3 = vpop.f32.mrf.mxu0 }
  0xd8   : > { %v345_v4 = vsel %vm344_vm2, %v340_v3, -inf }
  0xd9   : > { %346 = vmax.xlane.f32.xlu0 %v345_v4  ;;  %v578_v5 = vpop.f32.mrf.mxu0 }
 0x162   : > { %v347_v7 = vpop.xlane.xlu0 %346 }
 0x163   : > { %v348_v8 = vsub.f32 %v340_v3, %v347_v7 }
 0x165   : > { %v349_v9 = vmul.f32 1.442695, %v348_v8 }
 0x167   : > { %626 = vpow2.f32 %v349_v9 }
 0x174   : > { %v627_v10 = vpop.eup %626 }
 0x175   : > { %582 = vmatmul.mubr.msk.f32.vlgmr.msra.gmra.mxu1 %vm344_vm2, %v627_v10  ;;  %v351_v11 = vsel %vm344_vm2, %v627_v10, 0.0 }
 0x176   : > { %352 = vadd.xlane.f32.xlu0 %v351_v11 }
 0x1ff   : > { %v353_v12 = vpop.xlane.xlu0 %352 }
 0x200   : > { %628 = vrcp.f32 %v353_v12 }
 0x20d   : > { %v629_v13 = vpop.eup %628 }
 0x235   : > { %v423_v14 = vpop.f32.mrf.mxu1 }
 0x236   : > { %v428_v15 = vmul.f32 %v629_v13, %v423_v14 }
 0x237   : > { %v583_v16 = vpop.f32.mrf.mxu1 }
 0x238   : > { %429 = vst.msk [vmem:[%s263_s6] sm:$0xff] %vm267_vm1, %v428_v15 }
 0x239 PF: > { %s13_s16 = sadd.s32 1, %s668_s16   ;;  %s762_s12 = smov %s660_s14 }
 0x23a   : > { %p10_p7 = scmp.ge.s32.totalorder %s13_s16, 18   ;;  %s763_s13 = smov %s664_s15 }
 0x23b   : > { %s764_s14 = smov %s767_s17  ;;  %s765_s15 = smov %s771_s18 }
 0x23c   :  { %12 = sbr.rel (!%p10_p7) target bundleno = 3 (0x3), region = 68 }

// kernel: attention_forward.5
= control target key start
LH: loop header
LB: loop body
LE: loop exit
PB: predicated region body
PF: predicated region fallthrough
CT: control target
= control target key end

     0   :  { %vm28_vm0 = vcmask 261120   ;;  %s224_s0 = inlined_call_operand.vmem [shape: f32[16,32], index: 0, kind: input, shape index: {}]   ;;  %s225_s1 = inlined_call_operand.vmem [shape: f32[32,32], index: 1, kind: input, shape index: {}]   ;;  %s226_s2 = inlined_call_operand.vmem [shape: f32[1,32], index: 2, kind: input, shape index: {}]   ;;  %s227_s3 = inlined_call_operand.hbm [shape: f32[16,32], index: 3, kind: output, shape index: {}]  }
   0x1   :  { %v20_v0 = vld [vmem:[%s225_s1 + $0x18] sm:$0xff]  ;;  %v19_v1 = vld [vmem:[%s225_s1 + $0x10] sm:$0xff]  ;;  %v15_v2 = vld [vmem:[%s224_s0] sm:$0xff] }
   0x2   :  { %137 = vmatprep.subr.mxu0 %v20_v0  ;;  %v18_v3 = vld [vmem:[%s225_s1 + $0x8] sm:$0xff]  ;;  %145 = vmatprep.mubr.msk.f32.mxu0 %vm28_vm0, %v15_v2 }
   0x3   :  { %138 = vmatpush3.msra.mxu0 %v20_v0 }
   0x4   :  { %8 = vsyncpa [#allocation3], 0  ;;  %139 = vmatprep.subr.mxu0 %v19_v1  ;;  %v17_v4 = vld [vmem:[%s225_s1] sm:$0xff]  ;;  %v16_v5 = vld [vmem:[%s224_s0 + $0x8] sm:$0xff]  ;;  %s173_s26 = smov [#allocation2]  }
   0x5   :  { %140 = vmatpush3.msra.mxu0 %v19_v1  ;;  %v128_v6 = vld [vmem:[%s226_s2] ss:$0 sm:$0xff]  ;;  %s117_s27 = sshll.u32 %s173_s26, 4  ;;  %s118_s27 = int_to_ptr.vmem [resolvable:$true] %s117_s27 }
   0x6   :  { %141 = vmatprep.subr.mxu0 %v18_v3  ;;  %s151_s0 = scalar_lea.vmem %s118_s27, 256  ;;  %p156_p1 = scmp.lt.s32.totalorder %s118_s27, %s118_s27 }
   0x7   :  { %142 = vmatpush3.msra.mxu0 %v18_v3  ;;  %p152_p0 = scmp.ne.s32.totalorder %s118_s27, %s151_s0  ;;  %p157_p2 = scmp.lt.s32.totalorder %s151_s0, %s151_s0 }
   0x8   :  { %143 = vmatprep.subr.mxu0 %v17_v4 }
   0x9   :  { %144 = vmatpush3.msra.mxu0 %v17_v4  ;;  %p158_p3 = por %p157_p2, %p156_p1 }
   0xa   :  { %146 = vmatmul.mubr.msk.f32.vlgmr.msra.gmra.mxu0 %vm28_vm0, %v16_v5 }
   0xb   :  { %p159_p4 = pnand %p158_p3, %p152_p0 }
  0xca   :  { %v147_v7 = vpop.f32.mrf.mxu0 }
  0xcb   :  { %v107_v8 = vadd.f32 %v147_v7, %v128_v6 }
  0xcc   :  { %v101_v9 = vpop.f32.mrf.mxu0 }
  0xcd   :  { %111 = vst.msk [vmem:[#allocation2 + $0x8] sm:$0xff] %vm28_vm0, %v107_v8  ;;  %v102_v10 = vadd.f32 %v128_v6, %v101_v9 }
  0xcf   :  { %110 = vst.msk [vmem:[#allocation2] sm:$0xff] %vm28_vm0, %v102_v10 }
  0xd0   :  { %162 = shalt.err (!%p159_p4)
}
  0xd1   :  { %s174_s1 = smov 128   ;;  %s175_s2 = smov 8  }
  0xd2   :  { %123 = dma.vmem_to_hbm [thread:$0]  %s118_s27, 256, %s227_s3, [#allocation3], %s174_s1, %s174_s1, %s175_s2  }
  0xd3   :  { %171 = dma.done.wait [#allocation3], 256  }
  0xd4   :  { %172 = vsyncadd [#allocation3], 4294967040 }
  0xd5   :  { %127 = vsyncpa [#allocation3], 1 }

</bundles_post_ra>
